<compile_context>
chip_gen: v7x
topology: tpu7x:2x2x1
jax: 0.10.0
libtpu: 0.0.40
codegen_flags: <defaults>
</compile_context>

<pallas_src>
import jax
import jax.numpy as jnp
from jax.experimental import pallas as pl
from jax.experimental.pallas import tpu as pltpu


def project_excite_forward(x, params):
    """x: (B, C, D, H, W); params: conv_c / conv_cT weights+biases."""
    B, C, D, H, W = x.shape
    Cr = params["w_c"].shape[0]
    S = D * H * W
    K = D + H + W

    # Free row-major view, no HBM relayout pass.
    x_flat = x.reshape(B, C, S)

    # 1x1x1 convs as channel matrices.
    w1 = params["w_c"].reshape(Cr, C).astype(jnp.float32)    # conv_c
    b1 = params["b_c"].reshape(Cr, 1).astype(jnp.float32)
    w2 = params["w_cT"].reshape(C, Cr).astype(jnp.float32)   # conv_cT
    b2 = params["b_cT"].reshape(C, 1).astype(jnp.float32)

    # Stacked 0/1 selection matrix E (K, S): rows [0,D) pick equal-d lanes,
    # rows [D,D+H) equal-h lanes, rows [D+H,K) equal-w lanes.
    #   pooling  : means = x @ (E.T * per-row mean scale)  -> (C, K)  (exact means)
    #   broadcast: pre   = (w1 @ means) @ E + b1           -> (Cr, S)
    s_idx = jnp.arange(S)
    ed = (s_idx[None, :] // (H * W) == jnp.arange(D)[:, None]).astype(jnp.float32)
    eh = ((s_idx[None, :] // W) % H == jnp.arange(H)[:, None]).astype(jnp.float32)
    ew = (s_idx[None, :] % W == jnp.arange(W)[:, None]).astype(jnp.float32)
    e_mat = jnp.concatenate([ed, eh, ew], axis=0)                      # (K, S)
    scale = jnp.concatenate([
        jnp.full((D,), 1.0 / (H * W), jnp.float32),
        jnp.full((H,), 1.0 / (D * W), jnp.float32),
        jnp.full((W,), 1.0 / (D * H), jnp.float32)])
    et_mat = e_mat.T * scale[None, :]                                  # (S, K)

    def pe_kernel(x_ref, et_ref, e_ref, w1_ref, b1_ref, w2_ref, b2_ref, o_ref):
        xb = x_ref[0].astype(jnp.float32)                              # (C, S)
        # All three projection means in one matmul (normalization folded in Et).
        means = jnp.dot(xb, et_ref[...],
                        preferred_element_type=jnp.float32)            # (C, K)
        # conv_c applied on the tiny pooled tensor (linearity of 1x1x1 conv).
        p1 = jnp.dot(w1_ref[...], means,
                     preferred_element_type=jnp.float32)               # (Cr, K)
        # Broadcast pool_d/h/w contributions back to full spatial extent.
        pre = jnp.dot(p1, e_ref[...],
                      preferred_element_type=jnp.float32) + b1_ref[...]  # (Cr, S)
        r = jnp.maximum(pre, 0.0)
        gate = jax.nn.sigmoid(
            jnp.dot(w2_ref[...], r,
                    preferred_element_type=jnp.float32) + b2_ref[...])   # (C, S)
        o_ref[0] = (xb * gate).astype(o_ref.dtype)

    itemsize = jnp.dtype(x.dtype).itemsize
    flops = B * (2 * C * S * K          # pooling matmul
                 + 2 * Cr * C * K       # conv_c on pooled
                 + 2 * Cr * K * S       # broadcast matmul
                 + 2 * C * Cr * S       # conv_cT
                 + 6 * C * S)           # relu / bias / sigmoid-adjacent / mul
    cost = pl.CostEstimate(
        flops=flops,
        transcendentals=B * C * S,
        bytes_accessed=2 * B * C * S * itemsize
                       + 4 * (2 * K * S + 2 * C * Cr + C + Cr))

    out_flat = pl.pallas_call(
        pe_kernel,
        grid=(B,),
        out_shape=jax.ShapeDtypeStruct((B, C, S), x.dtype),
        in_specs=[
            pl.BlockSpec((1, C, S), lambda b: (b, 0, 0)),   # x slab (native layout)
            pl.BlockSpec((S, K), lambda b: (0, 0)),         # pooling matrix
            pl.BlockSpec((K, S), lambda b: (0, 0)),         # broadcast matrix
            pl.BlockSpec((Cr, C), lambda b: (0, 0)),        # w1
            pl.BlockSpec((Cr, 1), lambda b: (0, 0)),        # b1
            pl.BlockSpec((C, Cr), lambda b: (0, 0)),        # w2
            pl.BlockSpec((C, 1), lambda b: (0, 0)),         # b2
        ],
        out_specs=pl.BlockSpec((1, C, S), lambda b: (b, 0, 0)),
        compiler_params=pltpu.CompilerParams(
            dimension_semantics=("parallel",)),
        cost_estimate=cost,
    )(x_flat, et_mat, e_mat, w1, b1, w2, b2)

    return out_flat.reshape(B, C, D, H, W)


# ----------------------------- pure-JAX reference ---------------------------

def reference_forward(x, params):
    B, C, D, H, W = x.shape
    Cr = params["w_c"].shape[0]
    pw = jnp.mean(x, axis=(2, 3), keepdims=True)   # (B,C,1,1,W)
    ph = jnp.mean(x, axis=(2, 4), keepdims=True)   # (B,C,1,H,1)
    pd = jnp.mean(x, axis=(3, 4), keepdims=True)   # (B,C,D,1,1)
    z = pw + ph + pd                               # (B,C,D,H,W)
    w1 = params["w_c"].reshape(Cr, C)
    w2 = params["w_cT"].reshape(C, Cr)
    r = jnp.maximum(
        jnp.einsum("jc,bcdhw->bjdhw", w1, z)
        + params["b_c"].reshape(1, Cr, 1, 1, 1), 0.0)
    e = jax.nn.sigmoid(
        jnp.einsum("cj,bjdhw->bcdhw", w2, r)
        + params["b_cT"].reshape(1, C, 1, 1, 1))
    return x * e


# ------------------------------------ main ----------------------------------

if __name__ == "__main__":
    B, C, D, H, W = 2, 4, 4, 8, 8
    reduction_ratio = 2
    Cr = C // reduction_ratio

    key = jax.random.PRNGKey(0)
    ks = jax.random.split(key, 5)
    params = {
        "w_c":  0.3 * jax.random.normal(ks[0], (Cr, C, 1, 1, 1), jnp.float32),
        "b_c":  0.1 * jax.random.normal(ks[1], (Cr,), jnp.float32),
        "w_cT": 0.3 * jax.random.normal(ks[2], (C, Cr, 1, 1, 1), jnp.float32),
        "b_cT": 0.1 * jax.random.normal(ks[3], (C,), jnp.float32),
    }
    x = jax.random.normal(ks[4], (B, C, D, H, W), jnp.float32)

    out = jax.jit(project_excite_forward)(x, params)
    out = jax.block_until_ready(out)

    ref = reference_forward(x, params)
    assert out.shape == x.shape and out.dtype == x.dtype
    err = float(jnp.max(jnp.abs(out - ref)))
    assert jnp.allclose(out, ref, rtol=1e-4, atol=1e-4), err
    print("KERNEL_OK")
</pallas_src>

<mosaic_0001>
module attributes {stable_mosaic.version = 11 : i64} {
  func.func @pe_kernel(%arg0: i32, %arg1: memref<1x4x256xf32, #tpu.memory_space<vmem>>, %arg2: memref<256x20xf32, #tpu.memory_space<vmem>>, %arg3: memref<20x256xf32, #tpu.memory_space<vmem>>, %arg4: memref<2x4xf32, #tpu.memory_space<vmem>>, %arg5: memref<2x1xf32, #tpu.memory_space<vmem>>, %arg6: memref<4x2xf32, #tpu.memory_space<vmem>>, %arg7: memref<4x1xf32, #tpu.memory_space<vmem>>, %arg8: memref<1x4x256xf32, #tpu.memory_space<vmem>>) attributes {dimension_semantics = [#tpu.dimension_semantics<parallel>], iteration_bounds = array<i64: 2>, scalar_prefetch = 0 : i64, scratch_operands = 0 : i64, tpu.core_type = #tpu.core_type<tc>, window_params = [{transform_indices = @transform_0, window_bounds = array<i64: 1, 4, 256>}, {pipeline_mode = #tpu.pipeline_mode<synchronous>, transform_indices = @transform_1, window_bounds = array<i64: 256, 20>}, {pipeline_mode = #tpu.pipeline_mode<synchronous>, transform_indices = @transform_2, window_bounds = array<i64: 20, 256>}, {pipeline_mode = #tpu.pipeline_mode<synchronous>, transform_indices = @transform_3, window_bounds = array<i64: 2, 4>}, {pipeline_mode = #tpu.pipeline_mode<synchronous>, transform_indices = @transform_4, window_bounds = array<i64: 2, 1>}, {pipeline_mode = #tpu.pipeline_mode<synchronous>, transform_indices = @transform_5, window_bounds = array<i64: 4, 2>}, {pipeline_mode = #tpu.pipeline_mode<synchronous>, transform_indices = @transform_6, window_bounds = array<i64: 4, 1>}, {transform_indices = @transform_7, window_bounds = array<i64: 1, 4, 256>}]} {
    %c0 = arith.constant 0 : index
    %c0_0 = arith.constant 0 : index
    %c0_1 = arith.constant 0 : index
    %0 = vector.load %arg1[%c0, %c0_0, %c0_1] : memref<1x4x256xf32, #tpu.memory_space<vmem>>, vector<1x4x256xf32>
    %1 = vector.shape_cast %0 : vector<1x4x256xf32> to vector<4x256xf32>
    %c0_2 = arith.constant 0 : index
    %c0_3 = arith.constant 0 : index
    %2 = vector.load %arg2[%c0_2, %c0_3] : memref<256x20xf32, #tpu.memory_space<vmem>>, vector<256x20xf32>
    %cst = arith.constant dense<0.000000e+00> : vector<4x20xf32>
    %3 = tpu.matmul %1, %2, %cst {dimension_numbers = #tpu.dot_dimension_numbers<[1], [0], [0], [1], [0, 0, 1, 1], [], []>} : vector<4x256xf32>, vector<256x20xf32>, vector<4x20xf32> -> vector<4x20xf32>
    %c0_4 = arith.constant 0 : index
    %c0_5 = arith.constant 0 : index
    %4 = vector.load %arg4[%c0_4, %c0_5] : memref<2x4xf32, #tpu.memory_space<vmem>>, vector<2x4xf32>
    %cst_6 = arith.constant dense<0.000000e+00> : vector<2x20xf32>
    %5 = tpu.matmul %4, %3, %cst_6 {dimension_numbers = #tpu.dot_dimension_numbers<[1], [0], [0], [1], [0, 0, 1, 1], [], []>} : vector<2x4xf32>, vector<4x20xf32>, vector<2x20xf32> -> vector<2x20xf32>
    %c0_7 = arith.constant 0 : index
    %c0_8 = arith.constant 0 : index
    %6 = vector.load %arg3[%c0_7, %c0_8] : memref<20x256xf32, #tpu.memory_space<vmem>>, vector<20x256xf32>
    %cst_9 = arith.constant dense<0.000000e+00> : vector<2x256xf32>
    %7 = tpu.matmul %5, %6, %cst_9 {dimension_numbers = #tpu.dot_dimension_numbers<[1], [0], [0], [1], [0, 0, 1, 1], [], []>} : vector<2x20xf32>, vector<20x256xf32>, vector<2x256xf32> -> vector<2x256xf32>
    %c0_10 = arith.constant 0 : index
    %c0_11 = arith.constant 0 : index
    %8 = vector.load %arg5[%c0_10, %c0_11] : memref<2x1xf32, #tpu.memory_space<vmem>>, vector<2x1xf32>
    %9 = vector.broadcast %8 : vector<2x1xf32> to vector<2x256xf32>
    %10 = arith.addf %7, %9 : vector<2x256xf32>
    %cst_12 = arith.constant 0.000000e+00 : f32
    %11 = vector.broadcast %cst_12 : f32 to vector<2x256xf32>
    %12 = arith.maximumf %10, %11 : vector<2x256xf32>
    %c0_13 = arith.constant 0 : index
    %c0_14 = arith.constant 0 : index
    %13 = vector.load %arg6[%c0_13, %c0_14] : memref<4x2xf32, #tpu.memory_space<vmem>>, vector<4x2xf32>
    %cst_15 = arith.constant dense<0.000000e+00> : vector<4x256xf32>
    %14 = tpu.matmul %13, %12, %cst_15 {dimension_numbers = #tpu.dot_dimension_numbers<[1], [0], [0], [1], [0, 0, 1, 1], [], []>} : vector<4x2xf32>, vector<2x256xf32>, vector<4x256xf32> -> vector<4x256xf32>
    %c0_16 = arith.constant 0 : index
    %c0_17 = arith.constant 0 : index
    %15 = vector.load %arg7[%c0_16, %c0_17] : memref<4x1xf32, #tpu.memory_space<vmem>>, vector<4x1xf32>
    %16 = vector.broadcast %15 : vector<4x1xf32> to vector<4x256xf32>
    %17 = arith.addf %14, %16 : vector<4x256xf32>
    %18 = arith.negf %17 : vector<4x256xf32>
    %19 = math.exp %18 : vector<4x256xf32>
    %cst_18 = arith.constant 1.000000e+00 : f32
    %20 = vector.broadcast %cst_18 : f32 to vector<4x256xf32>
    %21 = arith.addf %20, %19 : vector<4x256xf32>
    %22 = arith.divf %20, %21 : vector<4x256xf32>
    %23 = arith.mulf %1, %22 : vector<4x256xf32>
    %c0_19 = arith.constant 0 : index
    %c0_20 = arith.constant 0 : index
    %c0_21 = arith.constant 0 : index
    %24 = vector.load %arg8[%c0_19, %c0_20, %c0_21] : memref<1x4x256xf32, #tpu.memory_space<vmem>>, vector<1x4x256xf32>
    %25 = vector.shape_cast %24 : vector<1x4x256xf32> to vector<4x256xf32>
    %26 = vector.shape_cast %23 : vector<4x256xf32> to vector<1x4x256xf32>
    tpu.vector_store %arg8[%c0_19, %c0_20, %c0_21], %26 {strides = array<i32>} : memref<1x4x256xf32, #tpu.memory_space<vmem>>, vector<1x4x256xf32>,
    return
  }
  func.func @transform_0(%arg0: i32) -> (i32, i32, i32) {
    %c0_i32 = arith.constant 0 : i32
    %c0_i32_0 = arith.constant 0 : i32
    %c0_i32_1 = arith.constant 0 : i32
    return %arg0, %c0_i32, %c0_i32_0 : i32, i32, i32
  }
  func.func @transform_1(%arg0: i32) -> (i32, i32) {
    %c0_i32 = arith.constant 0 : i32
    %c0_i32_0 = arith.constant 0 : i32
    %c0_i32_1 = arith.constant 0 : i32
    return %c0_i32, %c0_i32_0 : i32, i32
  }
  func.func @transform_2(%arg0: i32) -> (i32, i32) {
    %c0_i32 = arith.constant 0 : i32
    %c0_i32_0 = arith.constant 0 : i32
    %c0_i32_1 = arith.constant 0 : i32
    return %c0_i32, %c0_i32_0 : i32, i32
  }
  func.func @transform_3(%arg0: i32) -> (i32, i32) {
    %c0_i32 = arith.constant 0 : i32
    %c0_i32_0 = arith.constant 0 : i32
    %c0_i32_1 = arith.constant 0 : i32
    return %c0_i32, %c0_i32_0 : i32, i32
  }
  func.func @transform_4(%arg0: i32) -> (i32, i32) {
    %c0_i32 = arith.constant 0 : i32
    %c0_i32_0 = arith.constant 0 : i32
    %c0_i32_1 = arith.constant 0 : i32
    return %c0_i32, %c0_i32_0 : i32, i32
  }
  func.func @transform_5(%arg0: i32) -> (i32, i32) {
    %c0_i32 = arith.constant 0 : i32
    %c0_i32_0 = arith.constant 0 : i32
    %c0_i32_1 = arith.constant 0 : i32
    return %c0_i32, %c0_i32_0 : i32, i32
  }
  func.func @transform_6(%arg0: i32) -> (i32, i32) {
    %c0_i32 = arith.constant 0 : i32
    %c0_i32_0 = arith.constant 0 : i32
    %c0_i32_1 = arith.constant 0 : i32
    return %c0_i32, %c0_i32_0 : i32, i32
  }
  func.func @transform_7(%arg0: i32) -> (i32, i32, i32) {
    %c0_i32 = arith.constant 0 : i32
    %c0_i32_0 = arith.constant 0 : i32
    %c0_i32_1 = arith.constant 0 : i32
    return %arg0, %c0_i32, %c0_i32_0 : i32, i32, i32
  }
}

</mosaic_0001>

<bundles_post_ra>
// kernel: project_excite_forward.1
= control target key start
LH: loop header
LB: loop body
LE: loop exit
PB: predicated region body
PF: predicated region fallthrough
CT: control target
= control target key end

     0   :  { %s894_s24 = smov 0   ;;  %s1050_s0 = inlined_call_operand.vmem [shape: f32[2,4,256], index: 0, kind: input, shape index: {}]   ;;  %s1051_s1 = inlined_call_operand.vmem [shape: f32[256,20], index: 1, kind: input, shape index: {}]   ;;  %s1052_s2 = inlined_call_operand.vmem [shape: f32[20,256], index: 2, kind: input, shape index: {}]   ;;  %s1053_s3 = inlined_call_operand.vmem [shape: f32[2,4], index: 3, kind: input, shape index: {}]   ;;  %s1054_s4 = inlined_call_operand.vmem [shape: f32[2,1], index: 4, kind: input, shape index: {}]   ;;  %s1055_s5 = inlined_call_operand.vmem [shape: f32[4,2], index: 5, kind: input, shape index: {}]   ;;  %s1056_s6 = inlined_call_operand.vmem [shape: f32[4,1], index: 6, kind: input, shape index: {}]   ;;  %s1057_s7 = inlined_call_operand.vmem [shape: f32[2,4,256], index: 7, kind: output, shape index: {}]  }
   0x1 LB: > { %s721_s25 = sadd.s32 4294967295, %s849_s24   ;;  %p725_p0 = scmp.ge.s32.totalorder %s849_s24, 1  ;;  %s849_s24 = sphi %s894_s24, %s17_s24  }
   0x2   : > { %p237_p1 = scmp.lt.s32.totalorder %s849_s24, 3 }
   0x4   : > { %p238_p2 = pnand %p725_p0, %p237_p1 }
   0x5   : > { %v296_v0 = vld [vmem:[%s1051_s1 + $0x80] sm:$0xff] (!%p238_p2)  ;;  %v297_v1 = vld [vmem:[%s1051_s1 + $0x88] sm:$0xff] (!%p238_p2)  ;;  %p269_p3 = scmp.lt.s32.totalorder (!%p238_p2), %s721_s25, 1  ;;  %v298_v5 = vld [vmem:[%s1051_s1 + $0x90] sm:$0xff] (!%p238_p2)  ;;  %v851_v50 = vmov (!%p238_p2), 0.0   ;;  %vm852_vm0 = vmmov (!%p238_p2), 0  }
   0x6   : > { %241 = sbr.rel (%p238_p2) target bundleno = 933 (0x3a5), region = 48  ;;  %v280_v2 = vld [vmem:[%s1051_s1] sm:$0xff] (!%p238_p2)  ;;  %v786_v3 = vpack.c.bf16 (!%p238_p2), %v297_v1, %v296_v0  ;;  %v281_v4 = vld [vmem:[%s1051_s1 + $0x8] sm:$0xff] (!%p238_p2)  ;;  %v299_v6 = vld [vmem:[%s1051_s1 + $0x98] sm:$0xff] (!%p238_p2)  ;;  %781 = vmatprep.subr.mxu1 (!%p238_p2), %v851_v50  ;;  %783 = vmatprep.mubr.msk.f32.mxu1 (!%p238_p2), %vm852_vm0, %v851_v50  ;;  %vm390_vm1 = vcmask (!%p238_p2), 1043456   ;;  %vm386_vm2 = vcmask (!%p238_p2), 31744  }
   0x7   : > { %v788_v7 = vpack.c.bf16 (!%p238_p2), %v281_v4, %v280_v2  ;;  %v790_v8 = vpack.c.bf16 (!%p238_p2), %v299_v6, %v298_v5  ;;  %v282_v9 = vld [vmem:[%s1051_s1 + $0x10] sm:$0xff] (!%p238_p2)  ;;  %v283_v10 = vld [vmem:[%s1051_s1 + $0x18] sm:$0xff] (!%p238_p2)  ;;  %v300_v11 = vld [vmem:[%s1051_s1 + $0xa0] sm:$0xff] (!%p238_p2)  ;;  %v853_v0 = vmov (!%p238_p2), 0   ;;  %vm476_vm3 = vcmask (!%p238_p2), 162816  }
   0x8   : > { %787 = vmatprep.subr.bf16.mxu0 (!%p238_p2), %v786_v3  ;;  %v301_v12 = vld [vmem:[%s1051_s1 + $0xa8] sm:$0xff] (!%p238_p2)  ;;  %v792_v13 = vpack.c.bf16 (!%p238_p2), %v283_v10, %v282_v9  ;;  %v284_v15 = vld [vmem:[%s1051_s1 + $0x20] sm:$0xff] (!%p238_p2)  ;;  %v302_v17 = vld [vmem:[%s1051_s1 + $0xb0] sm:$0xff] (!%p238_p2)  ;;  %833 = vset.pattern.permute.xlu0 (!%p238_p2), %v853_v0  ;;  %vm570_vm4 = vcmask (!%p238_p2), 1041408   ;;  %vm566_vm5 = vcmask (!%p238_p2), 15360  }
   0x9   : > { %789 = vmatpush3.bf16.msra.mxu0 (!%p238_p2), %v788_v7  ;;  %v794_v14 = vpack.c.bf16 (!%p238_p2), %v301_v12, %v300_v11  ;;  %v285_v16 = vld [vmem:[%s1051_s1 + $0x28] sm:$0xff] (!%p238_p2)  ;;  %v303_v18 = vld [vmem:[%s1051_s1 + $0xb8] sm:$0xff] (!%p238_p2)  ;;  %v286_v21 = vld [vmem:[%s1051_s1 + $0x30] sm:$0xff] (!%p238_p2) }
   0xa   : > { %791 = vmatprep.subr.bf16.mxu0 (!%p238_p2), %v790_v8  ;;  %v796_v19 = vpack.c.bf16 (!%p238_p2), %v285_v16, %v284_v15  ;;  %v798_v20 = vpack.c.bf16 (!%p238_p2), %v303_v18, %v302_v17  ;;  %v287_v22 = vld [vmem:[%s1051_s1 + $0x38] sm:$0xff] (!%p238_p2)  ;;  %v304_v23 = vld [vmem:[%s1051_s1 + $0xc0] sm:$0xff] (!%p238_p2)  ;;  %v305_v24 = vld [vmem:[%s1051_s1 + $0xc8] sm:$0xff] (!%p238_p2) }
   0xb   : > { %v800_v27 = vpack.c.bf16 (!%p238_p2), %v287_v22, %v286_v21  ;;  %v802_v28 = vpack.c.bf16 (!%p238_p2), %v305_v24, %v304_v23  ;;  %v288_v29 = vld [vmem:[%s1051_s1 + $0x40] sm:$0xff] (!%p238_p2)  ;;  %v289_v30 = vld [vmem:[%s1051_s1 + $0x48] sm:$0xff] (!%p238_p2)  ;;  %v306_v31 = vld [vmem:[%s1051_s1 + $0xd0] sm:$0xff] (!%p238_p2) }
   0xc   : > { %v307_v32 = vld [vmem:[%s1051_s1 + $0xd8] sm:$0xff] (!%p238_p2)  ;;  %v804_v33 = vpack.c.bf16 (!%p238_p2), %v289_v30, %v288_v29  ;;  %v290_v35 = vld [vmem:[%s1051_s1 + $0x50] sm:$0xff] (!%p238_p2)  ;;  %v308_v37 = vld [vmem:[%s1051_s1 + $0xe0] sm:$0xff] (!%p238_p2) }
   0xd   : > { %s1059_s25 = smov (!%p269_p3, %s721_s25), 1  ;;  %793 = vmatpush3.bf16.msra.mxu0 %v792_v13  ;;  %v806_v34 = vpack.c.bf16 %v307_v32, %v306_v31  ;;  %v291_v36 = vld [vmem:[%s1051_s1 + $0x58] sm:$0xff]  ;;  %v309_v38 = vld [vmem:[%s1051_s1 + $0xe8] sm:$0xff]  ;;  %v292_v41 = vld [vmem:[%s1051_s1 + $0x60] sm:$0xff] }
   0xe   : > { %s742_s23 = sshll.u32 %s1059_s25, 3  ;;  %795 = vmatprep.subr.bf16.mxu0 %v794_v14  ;;  %v808_v39 = vpack.c.bf16 %v291_v36, %v290_v35  ;;  %v810_v40 = vpack.c.bf16 %v309_v38, %v308_v37  ;;  %v293_v42 = vld [vmem:[%s1051_s1 + $0x68] sm:$0xff]  ;;  %v310_v43 = vld [vmem:[%s1051_s1 + $0xf0] sm:$0xff]  ;;  %v311_v44 = vld [vmem:[%s1051_s1 + $0xf8] sm:$0xff] }
   0xf   : > { %s273_s13 = scalar_lea.vmem %s1050_s0, %s742_s23  ;;  %v812_v45 = vpack.c.bf16 %v293_v42, %v292_v41  ;;  %v814_v46 = vpack.c.bf16 %v311_v44, %v310_v43  ;;  %v294_v47 = vld [vmem:[%s1051_s1 + $0x70] sm:$0xff]  ;;  %v295_v48 = vld [vmem:[%s1051_s1 + $0x78] sm:$0xff]  ;;  %v465_v51 = vld [vmem:[%s1052_s2 + $0x8] sm:$0xff]  ;;  %s278_s12 = scalar_lea.vmem %s1057_s7, %s742_s23 }
  0x10   : > { %v964_v25 = vld [vmem:[%s273_s13] sm:$0xff]  ;;  %v816_v49 = vpack.c.bf16 %v295_v48, %v294_v47  ;;  %v467_v52 = vld [vmem:[%s1052_s2 + $0x18] sm:$0xff]  ;;  %v466_v54 = vld [vmem:[%s1052_s2 + $0x10] sm:$0xff] }
  0x11   : > { %v313_v26 = vcombine.high %v964_v25, %v964_v25  ;;  %797 = vmatpush3.bf16.msra.mxu0 %v796_v19  ;;  %v464_v53 = vld [vmem:[%s1052_s2] sm:$0xff]  ;;  %v818_v57 = vpack.c.bf16 %v467_v52, %v465_v51  ;;  %v469_v61 = vld [vmem:[%s1052_s2 + $0x28] sm:$0xf] }
  0x12   : > { %799 = vmatprep.subr.bf16.mxu0 %v798_v20  ;;  %v385_v59 = vld [vmem:[%s1053_s3] sm:$0x3]  ;;  %v820_v60 = vpack.c.bf16 %v466_v54, %v464_v53 }
  0x13   : > { %379 = vmatprep.mubr.f32.mxu0 %v313_v26  ;;  %v468_v62 = vld [vmem:[%s1052_s2 + $0x20] sm:$0xf] }
  0x14   : > { %v470_v63 = vld [vmem:[%s1054_s4] sm:$0x3] }
  0x15   : > { %801 = vmatpush3.bf16.msra.mxu0 %v800_v27  ;;  %473 = vperm.xlu0 %833, %v470_v63   ;;  %v560_v1 = vld [vmem:[%s1056_s6] sm:$0xf] }
  0x16   : > { %803 = vmatprep.subr.bf16.mxu0 %v802_v28  ;;  %v559_v11 = vld [vmem:[%s1055_s5] sm:$0xf] }
  0x19   : > { %805 = vmatpush3.bf16.msra.mxu0 %v804_v33  ;;  %563 = vperm.xlu0 %833, %v560_v1  }
  0x1a   : > { %807 = vmatprep.subr.bf16.mxu0 %v806_v34 }
  0x1d   : > { %809 = vmatpush3.bf16.msra.mxu0 %v808_v39 }
  0x1e   : > { %811 = vmatprep.subr.bf16.mxu0 %v810_v40 }
  0x21   : > { %813 = vmatpush3.bf16.msra.mxu0 %v812_v45 }
  0x22   : > { %815 = vmatprep.subr.bf16.mxu0 %v814_v46 }
  0x25   : > { %817 = vmatpush3.bf16.msra.mxu0 %v816_v49 }
  0x28   : > { %380 = vmatmul.mubr.f32.vlgmr.msra.gmra.mrb[0].mxu0 %v964_v25 }
  0x94   : > { %v474_v4 = vpop.permute.xlu0 %473 }
  0x98   : > { %v564_v12 = vpop.permute.xlu0 %563 }
  0xfb   : > { %v776_v55 = vpop.f32.mrb[0].mxu0 }
  0xfc   : > { %v777_v56 = vpop.f32.mrb[1].mxu0 }
  0xfd   : > { %v778_v58 = vadd.f32 %v777_v56, %v776_v55 }
  0xff   : > { %782 = vmatpush3.msk.msra.mxu1 %vm390_vm1, %v778_v58 }
 0x100   : > { %784 = vmatmul.mubr.msk.f32.vlgmr.msra.gmra.mrb[0].mxu1 %vm386_vm2, %v385_v59  ;;  %819 = vmatprep.subr.bf16.mxu1 %v818_v57 }
 0x101   : > { %821 = vmatpush1.bf16.msra.mxu1 %v820_v60  ;;  %550 = vmatprep.mubr.f32.mxu1 %v851_v50 }
 0x102   : > { %732 = vmatprep.subr.msk.mxu1 %vm390_vm1, %v469_v61 }
 0x105   : > { %733 = vmatpush1.msk.msra.mxu1 %vm390_vm1, %v468_v62 }
 0x1d3   : > { %v460_v2 = vpop.f32.mrb[0].mxu1 }
 0x1d4   : > { %v785_v3 = vpop.f32.mrb[1].mxu1  ;;  %734 = vmatmul.mubr.msk.f32.vlgmr.msra.gmra.mrb[2].mxu1 %vm476_vm3, %v460_v2 }
 0x1d5   : > { %641 = vmatprep.mubr.f32.mxu1 %v851_v50 }
 0x2a7   : > { %v552_v5 = vpop.f32.mrb[2].mxu1 }
 0x2a8   : > { %v553_v6 = vadd.f32 %v552_v5, %v474_v4  ;;  %v554_v7 = vpop.f32.mrb[3].mxu1 }
 0x2a9   : > { %v555_v8 = vadd.f32 %v554_v7, %v474_v4 }
 0x2aa   : > { %v557_v10 = vmax.f32 %v553_v6, 0.0 }
 0x2ab   : > { %v558_v9 = vmax.f32 %v555_v8, 0.0 }
 0x2ad   : > { %735 = vmatprep.subr.msk.mxu1 %vm570_vm4, %v558_v9 }
 0x2ae   : > { %736 = vmatpush1.msk.msra.mxu1 %vm570_vm4, %v557_v10 }
 0x2af   : > { %737 = vmatmul.mubr.msk.f32.vlgmr.msra.gmra.mrb[4].mxu1 %vm566_vm5, %v559_v11 }
 0x382   : > { %v643_v13 = vpop.f32.mrb[4].mxu1 }
 0x383   : > { %v644_v14 = vadd.f32 %v643_v13, %v564_v12  ;;  %v645_v15 = vpop.f32.mrb[5].mxu1 }
 0x384   : > { %v646_v16 = vadd.f32 %v645_v15, %v564_v12 }
 0x385   : > { %v738_v17 = vmul.f32 -1.442695, %v644_v14 }
 0x386   : > { %v739_v18 = vmul.f32 -1.442695, %v646_v16 }
 0x387   : > { %835 = vpow2.f32 %v738_v17 }
 0x388   : > { %837 = vpow2.f32 %v739_v18 }
 0x391   : > { %v836_v19 = vpop.eup %835 }
 0x392   : > { %v838_v20 = vpop.eup %837  ;;  %v654_v21 = vadd.f32 1.0, %v836_v19 }
 0x393   : > { %v655_v22 = vadd.f32 1.0, %v838_v20 }
 0x394   : > { %839 = vrcp.f32 %v654_v21 }
 0x395   : > { %841 = vrcp.f32 %v655_v22 }
 0x39e   : > { %v840_v23 = vpop.eup %839 }
 0x39f   : > { %v842_v24 = vpop.eup %841 }
 0x3a0   : > { %v662_v26 = vcombine.low %v840_v23, %v842_v24 }
 0x3a2   : > { %v664_v27 = vmul.f32 %v662_v26, %v964_v25 }
 0x3a4   : > { %665 = vst [vmem:[%s278_s12] sm:$0xff] %v664_v27 }
 0x3a5 PF: > { %s17_s24 = sadd.s32 1, %s849_s24  }
 0x3a6   : > { %p14_p4 = scmp.ge.s32.totalorder %s17_s24, 4  }
 0x3a8   :  { %16 = sbr.rel (!%p14_p4) target bundleno = 1 (0x1), region = 78 }

</bundles_post_ra>
